<compile_context>
chip_gen: v5e
topology: v5e:2x2
jax: 0.10.0
libtpu: 0.0.40
codegen_flags: <defaults>
</compile_context>

<pallas_src>
import functools

import jax
import jax.numpy as jnp
from jax import lax
from jax.experimental import pallas as pl
from jax.experimental.pallas import tpu as pltpu


# ---------------------------------------------------------------------------
# Kernel 1: Q/K/V projections, written head-grouped (B, Hg, T, dg).
# ---------------------------------------------------------------------------
def qkv_projection_kernel(x_ref, wq_ref, bq_ref, wk_ref, bk_ref, wv_ref, bv_ref,
                          q_ref, k_ref, v_ref, *, head_groups, group_dim, scale):
    x = x_ref[0]                        # (Rt, D) f32
    xb = x.astype(wq_ref.dtype)         # bf16 (or f32) MXU input
    # 1/sqrt(d_head) folded into q once, here.
    q = (jnp.dot(xb, wq_ref[...], preferred_element_type=jnp.float32) + bq_ref[0]) * scale
    k = jnp.dot(xb, wk_ref[...], preferred_element_type=jnp.float32) + bk_ref[0]
    v = jnp.dot(xb, wv_ref[...], preferred_element_type=jnp.float32) + bv_ref[0]
    for g in range(head_groups):        # static loop; static lane slices only
        lo = g * group_dim
        q_ref[0, g] = q[:, lo:lo + group_dim].astype(q_ref.dtype)
        k_ref[0, g] = k[:, lo:lo + group_dim].astype(k_ref.dtype)
        v_ref[0, g] = v[:, lo:lo + group_dim].astype(v_ref.dtype)


# ---------------------------------------------------------------------------
# Kernel 2: per (batch, query-tile): attention -> AddNorm -> FFN -> AddNorm.
# ---------------------------------------------------------------------------
def attention_ffn_kernel(x_ref, q_ref, k_ref, v_ref,
                         g1_ref, be1_ref, w1_ref, b1_ref, w2_ref, b2_ref,
                         g2_ref, be2_ref, out_ref, *rest,
                         heads_per_group, head_dim, with_attn):
    if with_attn:
        attn_ref, ctx_ref = rest
    else:
        attn_ref = None
        (ctx_ref,) = rest

    head_groups = q_ref.shape[1]
    mxu_dtype = q_ref.dtype
    qk_dims = (((1,), (1,)), ((), ()))   # contract the head-dim axis of q and k (no k.T)

    def group_body(g, carry):
        qg = q_ref[0, g]                 # (Tq, dg)  dynamic index on a leading axis only
        kg = k_ref[0, g]                 # (T,  dg)
        vg = v_ref[0, g]                 # (T,  dg)
        parts = []
        for j in range(heads_per_group):          # static; lane offsets are static
            lo = j * head_dim
            qh = qg[:, lo:lo + head_dim]
            kh = kg[:, lo:lo + head_dim]
            vh = vg[:, lo:lo + head_dim]
            s = lax.dot_general(qh, kh, dimension_numbers=qk_dims,
                                preferred_element_type=jnp.float32)   # (Tq, T)
            s = s - jnp.max(s, axis=-1, keepdims=True)
            p = jnp.exp(s)
            # Exact reciprocal of the tiny (Tq, 1) row-sum: attention rows sum to 1.
            pn = p * (1.0 / jnp.sum(p, axis=-1, keepdims=True))
            if attn_ref is not None:
                attn_ref[g * heads_per_group + j, 0] = pn.astype(attn_ref.dtype)
            parts.append(jnp.dot(pn.astype(mxu_dtype), vh,
                                 preferred_element_type=jnp.float32))  # (Tq, dh)
        ctx_ref[g] = parts[0] if heads_per_group == 1 else jnp.concatenate(parts, axis=-1)
        return carry

    # Rolled loop over head groups: bounded live ranges, flat code size; the scheduler
    # can overlap group g's softmax (VPU/EUP) with group g+1's QK^T (MXU).
    lax.fori_loop(0, head_groups, group_body, 0)

    def layer_norm(y, gamma, beta):
        mu = jnp.mean(y, axis=-1, keepdims=True)
        var = jnp.mean(jnp.square(y - mu), axis=-1, keepdims=True)
        return (y - mu) * lax.rsqrt(var + 1e-5) * gamma + beta

    x = x_ref[0]                                               # (Tq, D) f32 residual
    if head_groups == 1:
        ctx = ctx_ref[0]
    else:
        ctx = jnp.concatenate([ctx_ref[g] for g in range(head_groups)], axis=-1)

    out1 = layer_norm(ctx + x, g1_ref[0], be1_ref[0])          # AddNorm #1  (Tq, D) f32

    h1 = jnp.dot(out1.astype(mxu_dtype), w1_ref[...],
                 preferred_element_type=jnp.float32) + b1_ref[0]
    h1 = jnp.maximum(h1, 0.0)                                  # ReLU (dropout = identity)
    ff = jnp.dot(h1.astype(mxu_dtype), w2_ref[...],
                 preferred_element_type=jnp.float32) + b2_ref[0]

    out_ref[0] = layer_norm(ff + out1, g2_ref[0], be2_ref[0])  # AddNorm #2


# ---------------------------------------------------------------------------
# Sizing helpers (generation-aware VMEM budgeting).
# ---------------------------------------------------------------------------
def _heads_per_group(num_heads, head_dim):
    """Largest divisor of num_heads whose group lane width (hp*dh) is <= 128."""
    if head_dim >= 128:
        return 1
    target = max(1, 128 // head_dim)
    for cand in range(min(num_heads, target), 0, -1):
        if num_heads % cand == 0:
            return cand
    return 1


def _vmem_limit_bytes():
    """~3/4 of physical VMEM: v5e/v6e (128 MiB) -> ~96 MiB, v7x (64 MiB) -> ~48 MiB.

    The try/except only guards the hardware *query* (unavailable when tracing off-TPU);
    it never wraps the pallas_call itself, so real kernel errors propagate.
    """
    cap = None
    try:
        cap = getattr(pltpu.get_tpu_info(), "vmem_capacity_bytes", None)
    except Exception:
        cap = None
    if not cap:
        cap = 64 * 1024 * 1024          # conservative (v7x-sized) fallback
    return (int(cap) * 3) // 4


def _attention_ffn_step_bytes(tq, *, T, D, F, H, qkv_bytes, attn_bytes, with_attn):
    """Rough per-grid-step VMEM footprint of the fused attention+FFN kernel."""
    b = 0
    b += 2 * tq * D * 4                     # x block (double buffered)
    b += 2 * tq * D * qkv_bytes             # q block
    b += 2 * 2 * T * D * qkv_bytes          # k + v blocks (full T, resident per batch)
    b += 2 * tq * D * 4                     # out block
    if with_attn:
        b += 2 * H * tq * T * attn_bytes    # attention-map block
    b += 2 * 2 * D * F * qkv_bytes          # w1 + w2 (double buffered)
    b += tq * D * 4                         # ctx scratch
    b += 2 * tq * T * 4                     # score / prob transients
    b += tq * F * (4 + qkv_bytes)           # FFN hidden (f32 + MXU copy)
    b += 4 * tq * D * 4                     # out1 / ff / misc transients
    return int(b * 1.15)                    # headroom for compiler temporaries


def _pick_q_tile(T, B, budget_bytes, step_bytes_fn):
    """Largest legal query tile that fits the budget; prefer an even number of parallel
    grid steps so v7x's two TensorCores split the work evenly."""
    cands = [t for t in range(T, 0, -1) if T % t == 0 and (t == T or t % 8 == 0)]
    fitting = [t for t in cands if step_bytes_fn(t) <= budget_bytes]
    if not fitting:
        fitting = [cands[-1]]
    even = [t for t in fitting if (B * (T // t)) % 2 == 0]
    return even[0] if even else fitting[0]


def _pick_row_tile(T, max_rows=256):
    for t in range(min(T, max_rows), 0, -1):
        if T % t == 0 and (t == T or t % 8 == 0):
            return t
    return T


# ---------------------------------------------------------------------------
# Wrapper.
# ---------------------------------------------------------------------------
def speech_transformer_encoder_layer(x, params, num_heads, *,
                                     compute_dtype=jnp.bfloat16,
                                     attn_dtype=jnp.bfloat16,
                                     return_attn=True,
                                     q_tile=None):
    """kospeech SpeechTransformerEncoderLayer forward (eval mode).

    Returns (output f32 (B,T,D), attn (num_heads*B, T, T) head-major in `attn_dtype`);
    with return_attn=False only the output is returned (attention map never written).
    """
    x = x.astype(jnp.float32)
    B, T, D = x.shape
    F = params["w1"].shape[1]
    H = num_heads
    assert D % H == 0, "d_model must be divisible by num_heads"
    dh = D // H
    hp = _heads_per_group(H, dh)          # heads per lane-dense group
    Hg = H // hp
    dg = hp * dh
    scale = 1.0 / float(dh) ** 0.5

    qkv_bytes = jnp.dtype(compute_dtype).itemsize
    attn_bytes = jnp.dtype(attn_dtype).itemsize
    vmem_limit = _vmem_limit_bytes()

    # ---- kernel 1: Q/K/V projections (row tiled) -----------------------------------
    Rt = _pick_row_tile(T)
    qkv_call = pl.pallas_call(
        functools.partial(qkv_projection_kernel,
                          head_groups=Hg, group_dim=dg, scale=scale),
        grid=(B, T // Rt),
        in_specs=[
            pl.BlockSpec((1, Rt, D), lambda b, r: (b, r, 0)),
            pl.BlockSpec((D, D), lambda b, r: (0, 0)),
            pl.BlockSpec((1, D), lambda b, r: (0, 0)),
            pl.BlockSpec((D, D), lambda b, r: (0, 0)),
            pl.BlockSpec((1, D), lambda b, r: (0, 0)),
            pl.BlockSpec((D, D), lambda b, r: (0, 0)),
            pl.BlockSpec((1, D), lambda b, r: (0, 0)),
        ],
        out_specs=[
            pl.BlockSpec((1, Hg, Rt, dg), lambda b, r: (b, 0, r, 0)),
            pl.BlockSpec((1, Hg, Rt, dg), lambda b, r: (b, 0, r, 0)),
            pl.BlockSpec((1, Hg, Rt, dg), lambda b, r: (b, 0, r, 0)),
        ],
        out_shape=[
            jax.ShapeDtypeStruct((B, Hg, T, dg), compute_dtype),
            jax.ShapeDtypeStruct((B, Hg, T, dg), compute_dtype),
            jax.ShapeDtypeStruct((B, Hg, T, dg), compute_dtype),
        ],
        compiler_params=pltpu.CompilerParams(
            dimension_semantics=("parallel", "parallel"),
            vmem_limit_bytes=vmem_limit,
        ),
    )
    q, k, v = qkv_call(x,
                       params["wq"].astype(compute_dtype), params["bq"],
                       params["wk"].astype(compute_dtype), params["bk"],
                       params["wv"].astype(compute_dtype), params["bv"])

    # ---- kernel 2: attention + AddNorm + FFN + AddNorm (query-tiled) ----------------
    step_bytes = functools.partial(_attention_ffn_step_bytes, T=T, D=D, F=F, H=H,
                                   qkv_bytes=qkv_bytes, attn_bytes=attn_bytes,
                                   with_attn=return_attn)
    if q_tile is None:
        Tq = _pick_q_tile(T, B, vmem_limit, step_bytes)
    else:
        Tq = q_tile
        assert T % Tq == 0 and (Tq == T or Tq % 8 == 0), "invalid q_tile"
    Q = T // Tq

    in_specs = [
        pl.BlockSpec((1, Tq, D), lambda b, qi: (b, qi, 0)),          # x (residual)
        pl.BlockSpec((1, Hg, Tq, dg), lambda b, qi: (b, 0, qi, 0)),  # q (this tile)
        pl.BlockSpec((1, Hg, T, dg), lambda b, qi: (b, 0, 0, 0)),    # k (full T, resident)
        pl.BlockSpec((1, Hg, T, dg), lambda b, qi: (b, 0, 0, 0)),    # v (full T, resident)
        pl.BlockSpec((1, D), lambda b, qi: (0, 0)),                  # ln1 gamma
        pl.BlockSpec((1, D), lambda b, qi: (0, 0)),                  # ln1 beta
        pl.BlockSpec((D, F), lambda b, qi: (0, 0)),                  # w1
        pl.BlockSpec((1, F), lambda b, qi: (0, 0)),                  # b1
        pl.BlockSpec((F, D), lambda b, qi: (0, 0)),                  # w2
        pl.BlockSpec((1, D), lambda b, qi: (0, 0)),                  # b2
        pl.BlockSpec((1, D), lambda b, qi: (0, 0)),                  # ln2 gamma
        pl.BlockSpec((1, D), lambda b, qi: (0, 0)),                  # ln2 beta
    ]
    out_specs = [pl.BlockSpec((1, Tq, D), lambda b, qi: (b, qi, 0))]
    out_shape = [jax.ShapeDtypeStruct((B, T, D), jnp.float32)]
    if return_attn:
        # Head-major attention output -> the final (H*B, T, T) reshape is free.
        out_specs.append(pl.BlockSpec((H, 1, Tq, T), lambda b, qi: (0, b, qi, 0)))
        out_shape.append(jax.ShapeDtypeStruct((H, B, T, T), attn_dtype))

    attn_call = pl.pallas_call(
        functools.partial(attention_ffn_kernel,
                          heads_per_group=hp, head_dim=dh, with_attn=return_attn),
        grid=(B, Q),
        in_specs=in_specs,
        out_specs=out_specs,
        out_shape=out_shape,
        scratch_shapes=[pltpu.VMEM((Hg, Tq, dg), jnp.float32)],
        compiler_params=pltpu.CompilerParams(
            dimension_semantics=("parallel", "parallel"),
            vmem_limit_bytes=vmem_limit,
        ),
    )

    results = attn_call(
        x, q, k, v,
        params["ln1_g"], params["ln1_b"],
        params["w1"].astype(compute_dtype), params["b1"],
        params["w2"].astype(compute_dtype), params["b2"],
        params["ln2_g"], params["ln2_b"],
    )
    if return_attn:
        out, attn_hb = results
        return out, attn_hb.reshape(H * B, T, T)
    (out,) = results
    return out


# ---------------------------------------------------------------------------
# Pure-JAX reference and test harness.
# ---------------------------------------------------------------------------
def reference_jax(x, params, num_heads):
    """Pure-JAX f32 reference (HIGHEST matmul precision) for correctness checking."""
    B, T, D = x.shape
    dh = D // num_heads
    hi = lax.Precision.HIGHEST
    q = jnp.dot(x, params["wq"], precision=hi) + params["bq"][0]
    k = jnp.dot(x, params["wk"], precision=hi) + params["bk"][0]
    v = jnp.dot(x, params["wv"], precision=hi) + params["bv"][0]
    q = q.reshape(B, T, num_heads, dh).transpose(0, 2, 1, 3)
    k = k.reshape(B, T, num_heads, dh).transpose(0, 2, 1, 3)
    v = v.reshape(B, T, num_heads, dh).transpose(0, 2, 1, 3)
    scores = jnp.einsum("bhtd,bhsd->bhts", q, k, precision=hi) / jnp.sqrt(jnp.float32(dh))
    attn = jax.nn.softmax(scores, axis=-1)
    ctx = jnp.einsum("bhts,bhsd->bhtd", attn, v,
                     precision=hi).transpose(0, 2, 1, 3).reshape(B, T, D)

    def ln(y, g, b):
        mu = jnp.mean(y, axis=-1, keepdims=True)
        var = jnp.mean((y - mu) ** 2, axis=-1, keepdims=True)
        return (y - mu) * lax.rsqrt(var + 1e-5) * g[0] + b[0]

    out1 = ln(ctx + x, params["ln1_g"], params["ln1_b"])
    h1 = jnp.maximum(jnp.dot(out1, params["w1"], precision=hi) + params["b1"][0], 0.0)
    ff = jnp.dot(h1, params["w2"], precision=hi) + params["b2"][0]
    out2 = ln(ff + out1, params["ln2_g"], params["ln2_b"])
    attn_flat = jnp.transpose(attn, (1, 0, 2, 3)).reshape(num_heads * B, T, T)
    return out2, attn_flat


def init_params(key, d_model, d_ff):
    ks = jax.random.split(key, 10)
    s = 0.1
    return {
        "wq": s * jax.random.normal(ks[0], (d_model, d_model), jnp.float32),
        "bq": s * jax.random.normal(ks[1], (1, d_model), jnp.float32),
        "wk": s * jax.random.normal(ks[2], (d_model, d_model), jnp.float32),
        "bk": s * jax.random.normal(ks[3], (1, d_model), jnp.float32),
        "wv": s * jax.random.normal(ks[4], (d_model, d_model), jnp.float32),
        "bv": s * jax.random.normal(ks[5], (1, d_model), jnp.float32),
        "ln1_g": jnp.ones((1, d_model), jnp.float32),
        "ln1_b": jnp.zeros((1, d_model), jnp.float32),
        "w1": s * jax.random.normal(ks[6], (d_model, d_ff), jnp.float32),
        "b1": s * jax.random.normal(ks[7], (1, d_ff), jnp.float32),
        "w2": s * jax.random.normal(ks[8], (d_ff, d_model), jnp.float32),
        "b2": s * jax.random.normal(ks[9], (1, d_model), jnp.float32),
        "ln2_g": jnp.ones((1, d_model), jnp.float32),
        "ln2_b": jnp.zeros((1, d_model), jnp.float32),
    }


if __name__ == "__main__":
    # Small shapes consistent with the module: (batch, seq, d_model), num_heads, d_ff.
    B, T, D, H, F = 4, 16, 32, 4, 64

    key = jax.random.PRNGKey(0)
    k_x, k_p = jax.random.split(key)
    x = jax.random.normal(k_x, (B, T, D), jnp.float32)
    params = init_params(k_p, D, F)

    ref_out, ref_attn = reference_jax(x, params, H)

    # 1) All-f32 path: moderately tight tolerances to catch layout / indexing bugs
    #    (tolerance covers backend matmul-precision differences only).
    out32, attn32 = speech_transformer_encoder_layer(
        x, params, H, compute_dtype=jnp.float32, attn_dtype=jnp.float32)
    out32 = jax.block_until_ready(out32)
    attn32 = jax.block_until_ready(attn32)
    assert out32.shape == (B, T, D) and attn32.shape == (H * B, T, T)
    assert jnp.allclose(out32, ref_out, atol=1e-2, rtol=1e-2), \
        float(jnp.max(jnp.abs(out32 - ref_out)))
    assert jnp.allclose(attn32, ref_attn, atol=1e-2, rtol=1e-2), \
        float(jnp.max(jnp.abs(attn32 - ref_attn)))

    # 2) Default production path: bf16 MXU inputs (f32 accumulation) + bf16 attention map.
    out, attn = speech_transformer_encoder_layer(x, params, H)
    out = jax.block_until_ready(out)
    attn = jax.block_until_ready(attn)
    assert out.shape == (B, T, D) and attn.shape == (H * B, T, T)
    assert jnp.allclose(out, ref_out, atol=3e-2, rtol=3e-2), \
        float(jnp.max(jnp.abs(out - ref_out)))
    attn_f32 = attn.astype(jnp.float32)
    assert jnp.allclose(attn_f32, ref_attn, atol=2e-2, rtol=2e-2), \
        float(jnp.max(jnp.abs(attn_f32 - ref_attn)))

    # 3) Attention-map-free path (caller does not consume attn): output only.
    out_only = speech_transformer_encoder_layer(x, params, H, return_attn=False)
    out_only = jax.block_until_ready(out_only)
    assert jnp.allclose(out_only, ref_out, atol=3e-2, rtol=3e-2), \
        float(jnp.max(jnp.abs(out_only - ref_out)))

    print("KERNEL_OK")
</pallas_src>

<mosaic_0001>
module attributes {stable_mosaic.version = 11 : i64} {
  func.func @qkv_projection_kernel(%arg0: i32, %arg1: i32, %arg2: memref<1x16x32xf32, #tpu.memory_space<vmem>>, %arg3: memref<32x32xf32, #tpu.memory_space<vmem>>, %arg4: memref<1x32xf32, #tpu.memory_space<vmem>>, %arg5: memref<32x32xf32, #tpu.memory_space<vmem>>, %arg6: memref<1x32xf32, #tpu.memory_space<vmem>>, %arg7: memref<32x32xf32, #tpu.memory_space<vmem>>, %arg8: memref<1x32xf32, #tpu.memory_space<vmem>>, %arg9: memref<1x1x16x32xf32, #tpu.memory_space<vmem>>, %arg10: memref<1x1x16x32xf32, #tpu.memory_space<vmem>>, %arg11: memref<1x1x16x32xf32, #tpu.memory_space<vmem>>) attributes {dimension_semantics = [#tpu.dimension_semantics<parallel>, #tpu.dimension_semantics<parallel>], iteration_bounds = array<i64: 4, 1>, scalar_prefetch = 0 : i64, scratch_operands = 0 : i64, tpu.core_type = #tpu.core_type<tc>, window_params = [{transform_indices = @transform_0, window_bounds = array<i64: 1, 16, 32>}, {pipeline_mode = #tpu.pipeline_mode<synchronous>, transform_indices = @transform_1, window_bounds = array<i64: 32, 32>}, {pipeline_mode = #tpu.pipeline_mode<synchronous>, transform_indices = @transform_2, window_bounds = array<i64: 1, 32>}, {pipeline_mode = #tpu.pipeline_mode<synchronous>, transform_indices = @transform_3, window_bounds = array<i64: 32, 32>}, {pipeline_mode = #tpu.pipeline_mode<synchronous>, transform_indices = @transform_4, window_bounds = array<i64: 1, 32>}, {pipeline_mode = #tpu.pipeline_mode<synchronous>, transform_indices = @transform_5, window_bounds = array<i64: 32, 32>}, {pipeline_mode = #tpu.pipeline_mode<synchronous>, transform_indices = @transform_6, window_bounds = array<i64: 1, 32>}, {transform_indices = @transform_7, window_bounds = array<i64: 1, 1, 16, 32>}, {transform_indices = @transform_8, window_bounds = array<i64: 1, 1, 16, 32>}, {transform_indices = @transform_9, window_bounds = array<i64: 1, 1, 16, 32>}]} {
    %c0 = arith.constant 0 : index
    %c0_0 = arith.constant 0 : index
    %c0_1 = arith.constant 0 : index
    %0 = vector.load %arg2[%c0, %c0_0, %c0_1] : memref<1x16x32xf32, #tpu.memory_space<vmem>>, vector<1x16x32xf32>
    %1 = vector.shape_cast %0 : vector<1x16x32xf32> to vector<16x32xf32>
    %c0_2 = arith.constant 0 : index
    %c0_3 = arith.constant 0 : index
    %2 = vector.load %arg3[%c0_2, %c0_3] : memref<32x32xf32, #tpu.memory_space<vmem>>, vector<32x32xf32>
    %cst = arith.constant dense<0.000000e+00> : vector<16x32xf32>
    %3 = tpu.matmul %1, %2, %cst {dimension_numbers = #tpu.dot_dimension_numbers<[1], [0], [0], [1], [0, 0, 1, 1], [], []>} : vector<16x32xf32>, vector<32x32xf32>, vector<16x32xf32> -> vector<16x32xf32>
    %c0_4 = arith.constant 0 : index
    %c0_5 = arith.constant 0 : index
    %4 = vector.load %arg4[%c0_4, %c0_5] : memref<1x32xf32, #tpu.memory_space<vmem>>, vector<1x32xf32>
    %5 = vector.shape_cast %4 : vector<1x32xf32> to vector<32xf32>
    %6 = vector.shape_cast %5 : vector<32xf32> to vector<1x32xf32>
    %7 = vector.broadcast %6 : vector<1x32xf32> to vector<16x32xf32>
    %8 = arith.addf %3, %7 : vector<16x32xf32>
    %cst_6 = arith.constant 0.353553385 : f32
    %9 = vector.broadcast %cst_6 : f32 to vector<16x32xf32>
    %10 = arith.mulf %8, %9 : vector<16x32xf32>
    %c0_7 = arith.constant 0 : index
    %c0_8 = arith.constant 0 : index
    %11 = vector.load %arg5[%c0_7, %c0_8] : memref<32x32xf32, #tpu.memory_space<vmem>>, vector<32x32xf32>
    %cst_9 = arith.constant dense<0.000000e+00> : vector<16x32xf32>
    %12 = tpu.matmul %1, %11, %cst_9 {dimension_numbers = #tpu.dot_dimension_numbers<[1], [0], [0], [1], [0, 0, 1, 1], [], []>} : vector<16x32xf32>, vector<32x32xf32>, vector<16x32xf32> -> vector<16x32xf32>
    %c0_10 = arith.constant 0 : index
    %c0_11 = arith.constant 0 : index
    %13 = vector.load %arg6[%c0_10, %c0_11] : memref<1x32xf32, #tpu.memory_space<vmem>>, vector<1x32xf32>
    %14 = vector.shape_cast %13 : vector<1x32xf32> to vector<32xf32>
    %15 = vector.shape_cast %14 : vector<32xf32> to vector<1x32xf32>
    %16 = vector.broadcast %15 : vector<1x32xf32> to vector<16x32xf32>
    %17 = arith.addf %12, %16 : vector<16x32xf32>
    %c0_12 = arith.constant 0 : index
    %c0_13 = arith.constant 0 : index
    %18 = vector.load %arg7[%c0_12, %c0_13] : memref<32x32xf32, #tpu.memory_space<vmem>>, vector<32x32xf32>
    %cst_14 = arith.constant dense<0.000000e+00> : vector<16x32xf32>
    %19 = tpu.matmul %1, %18, %cst_14 {dimension_numbers = #tpu.dot_dimension_numbers<[1], [0], [0], [1], [0, 0, 1, 1], [], []>} : vector<16x32xf32>, vector<32x32xf32>, vector<16x32xf32> -> vector<16x32xf32>
    %c0_15 = arith.constant 0 : index
    %c0_16 = arith.constant 0 : index
    %20 = vector.load %arg8[%c0_15, %c0_16] : memref<1x32xf32, #tpu.memory_space<vmem>>, vector<1x32xf32>
    %21 = vector.shape_cast %20 : vector<1x32xf32> to vector<32xf32>
    %22 = vector.shape_cast %21 : vector<32xf32> to vector<1x32xf32>
    %23 = vector.broadcast %22 : vector<1x32xf32> to vector<16x32xf32>
    %24 = arith.addf %19, %23 : vector<16x32xf32>
    %c0_17 = arith.constant 0 : index
    %c0_18 = arith.constant 0 : index
    %c0_19 = arith.constant 0 : index
    %c0_20 = arith.constant 0 : index
    %25 = vector.load %arg9[%c0_17, %c0_18, %c0_19, %c0_20] : memref<1x1x16x32xf32, #tpu.memory_space<vmem>>, vector<1x1x16x32xf32>
    %26 = vector.shape_cast %25 : vector<1x1x16x32xf32> to vector<16x32xf32>
    %27 = vector.shape_cast %10 : vector<16x32xf32> to vector<1x1x16x32xf32>
    tpu.vector_store %arg9[%c0_17, %c0_18, %c0_19, %c0_20], %27 {strides = array<i32>} : memref<1x1x16x32xf32, #tpu.memory_space<vmem>>, vector<1x1x16x32xf32>,
    %c0_21 = arith.constant 0 : index
    %c0_22 = arith.constant 0 : index
    %c0_23 = arith.constant 0 : index
    %c0_24 = arith.constant 0 : index
    %28 = vector.load %arg10[%c0_21, %c0_22, %c0_23, %c0_24] : memref<1x1x16x32xf32, #tpu.memory_space<vmem>>, vector<1x1x16x32xf32>
    %29 = vector.shape_cast %28 : vector<1x1x16x32xf32> to vector<16x32xf32>
    %30 = vector.shape_cast %17 : vector<16x32xf32> to vector<1x1x16x32xf32>
    tpu.vector_store %arg10[%c0_21, %c0_22, %c0_23, %c0_24], %30 {strides = array<i32>} : memref<1x1x16x32xf32, #tpu.memory_space<vmem>>, vector<1x1x16x32xf32>,
    %c0_25 = arith.constant 0 : index
    %c0_26 = arith.constant 0 : index
    %c0_27 = arith.constant 0 : index
    %c0_28 = arith.constant 0 : index
    %31 = vector.load %arg11[%c0_25, %c0_26, %c0_27, %c0_28] : memref<1x1x16x32xf32, #tpu.memory_space<vmem>>, vector<1x1x16x32xf32>
    %32 = vector.shape_cast %31 : vector<1x1x16x32xf32> to vector<16x32xf32>
    %33 = vector.shape_cast %24 : vector<16x32xf32> to vector<1x1x16x32xf32>
    tpu.vector_store %arg11[%c0_25, %c0_26, %c0_27, %c0_28], %33 {strides = array<i32>} : memref<1x1x16x32xf32, #tpu.memory_space<vmem>>, vector<1x1x16x32xf32>,
    return
  }
  func.func @transform_0(%arg0: i32, %arg1: i32) -> (i32, i32, i32) {
    %c0_i32 = arith.constant 0 : i32
    %c0_i32_0 = arith.constant 0 : i32
    return %arg0, %arg1, %c0_i32 : i32, i32, i32
  }
  func.func @transform_1(%arg0: i32, %arg1: i32) -> (i32, i32) {
    %c0_i32 = arith.constant 0 : i32
    %c0_i32_0 = arith.constant 0 : i32
    %c0_i32_1 = arith.constant 0 : i32
    return %c0_i32, %c0_i32_0 : i32, i32
  }
  func.func @transform_2(%arg0: i32, %arg1: i32) -> (i32, i32) {
    %c0_i32 = arith.constant 0 : i32
    %c0_i32_0 = arith.constant 0 : i32
    %c0_i32_1 = arith.constant 0 : i32
    return %c0_i32, %c0_i32_0 : i32, i32
  }
  func.func @transform_3(%arg0: i32, %arg1: i32) -> (i32, i32) {
    %c0_i32 = arith.constant 0 : i32
    %c0_i32_0 = arith.constant 0 : i32
    %c0_i32_1 = arith.constant 0 : i32
    return %c0_i32, %c0_i32_0 : i32, i32
  }
  func.func @transform_4(%arg0: i32, %arg1: i32) -> (i32, i32) {
    %c0_i32 = arith.constant 0 : i32
    %c0_i32_0 = arith.constant 0 : i32
    %c0_i32_1 = arith.constant 0 : i32
    return %c0_i32, %c0_i32_0 : i32, i32
  }
  func.func @transform_5(%arg0: i32, %arg1: i32) -> (i32, i32) {
    %c0_i32 = arith.constant 0 : i32
    %c0_i32_0 = arith.constant 0 : i32
    %c0_i32_1 = arith.constant 0 : i32
    return %c0_i32, %c0_i32_0 : i32, i32
  }
  func.func @transform_6(%arg0: i32, %arg1: i32) -> (i32, i32) {
    %c0_i32 = arith.constant 0 : i32
    %c0_i32_0 = arith.constant 0 : i32
    %c0_i32_1 = arith.constant 0 : i32
    return %c0_i32, %c0_i32_0 : i32, i32
  }
  func.func @transform_7(%arg0: i32, %arg1: i32) -> (i32, i32, i32, i32) {
    %c0_i32 = arith.constant 0 : i32
    %c0_i32_0 = arith.constant 0 : i32
    %c0_i32_1 = arith.constant 0 : i32
    return %arg0, %c0_i32, %arg1, %c0_i32_0 : i32, i32, i32, i32
  }
  func.func @transform_8(%arg0: i32, %arg1: i32) -> (i32, i32, i32, i32) {
    %c0_i32 = arith.constant 0 : i32
    %c0_i32_0 = arith.constant 0 : i32
    %c0_i32_1 = arith.constant 0 : i32
    return %arg0, %c0_i32, %arg1, %c0_i32_0 : i32, i32, i32, i32
  }
  func.func @transform_9(%arg0: i32, %arg1: i32) -> (i32, i32, i32, i32) {
    %c0_i32 = arith.constant 0 : i32
    %c0_i32_0 = arith.constant 0 : i32
    %c0_i32_1 = arith.constant 0 : i32
    return %arg0, %c0_i32, %arg1, %c0_i32_0 : i32, i32, i32, i32
  }
}

</mosaic_0001>

<bundles_post_ra>
// kernel: tpu_custom_call.1
= control target key start
LH: loop header
LB: loop body
LE: loop exit
PB: predicated region body
PF: predicated region fallthrough
CT: control target
= control target key end

     0   :  { %s1576_s0 = inlined_call_operand.hbm [shape: f32[4,16,32], index: 0, kind: input, shape index: {}]   ;;  %s1577_s1 = inlined_call_operand.hbm [shape: f32[32,32], index: 1, kind: input, shape index: {}]   ;;  %s1578_s2 = inlined_call_operand.vmem [shape: f32[1,32], index: 2, kind: input, shape index: {}]   ;;  %s1579_s3 = inlined_call_operand.hbm [shape: f32[32,32], index: 3, kind: input, shape index: {}]   ;;  %s1580_s4 = inlined_call_operand.vmem [shape: f32[1,32], index: 4, kind: input, shape index: {}]   ;;  %s1581_s5 = inlined_call_operand.hbm [shape: f32[32,32], index: 5, kind: input, shape index: {}]   ;;  %s1582_s6 = inlined_call_operand.vmem [shape: f32[1,32], index: 6, kind: input, shape index: {}]   ;;  %s1583_s7 = inlined_call_operand.hbm [shape: f32[4,1,16,32], index: 7, kind: output, shape index: {0}]   ;;  %s1584_s8 = inlined_call_operand.hbm [shape: f32[4,1,16,32], index: 8, kind: output, shape index: {1}]   ;;  %s1585_s9 = inlined_call_operand.hbm [shape: f32[4,1,16,32], index: 9, kind: output, shape index: {2}]  }
   0x1   :  { %1594 = sst [smem:[#allocation23_spill]] %s1577_s1 }
   0x2   :  { %1595 = sst [smem:[#allocation24_spill]] %s1579_s3 }
   0x3   :  { %1596 = sst [smem:[#allocation25_spill]] %s1581_s5 }
   0x4   :  { %15 = vsyncpa [#allocation3], 0 }
   0x5   :  { %17 = vsyncpa [#allocation3 + $0x1], 0 }
   0x6   :  { %18 = vsyncpa [#allocation6], 0 }
   0x7   :  { %19 = vsyncpa [#allocation9], 0 }
   0x8   :  { %20 = vsyncpa [#allocation4], 0 }
   0x9   :  { %22 = vsyncpa [#allocation4 + $0x1], 0 }
   0xa   :  { %23 = vsyncpa [#allocation12], 0 }
   0xb   :  { %25 = vsyncpa [#allocation12 + $0x1], 0  ;;  %s1290_s30 = smov 0   ;;  %s1292_s10 = smov 0  }
   0xc   :  { %s1294_s11 = smov 0   ;;  %s1296_s12 = smov 0  }
   0xd   :  { %s1298_s13 = smov 0   ;;  %s1300_s14 = smov 0  }
   0xe LB: > { %1597 = sst [smem:[#allocation19_spill]] %s1211_s30  ;;  %s1321_s15 = sadd.s32 4294967295, %s1231_s14   ;;  %s1231_s14 = sphi %s1300_s14, %s31_s14   ;;  %s1227_s13 = sphi %s1298_s13, %s1621_s13   ;;  %s1223_s12 = sphi %s1296_s12, %s1620_s12   ;;  %s1219_s11 = sphi %s1294_s11, %s1619_s11   ;;  %s1215_s10 = sphi %s1292_s10, %s1618_s10   ;;  %s1211_s30 = sphi %s1290_s30, %s1617_s30  }
   0xf   : > { %1598 = sst [smem:[#allocation20_spill]] %s1231_s14  ;;  %s1586_s16 = sadd.s32 4294967294, %s1231_s14  }
  0x10   : > { %p65_p0 = scmp.ne.s32.totalorder %s1215_s10, %s1211_s30  ;;  %p66_p1 = scmp.eq.s32.totalorder %s1321_s15, 0 }
  0x11   : > { %p217_p2 = scmp.eq.s32.totalorder %s1321_s15, 3  ;;  %p223_p3 = scmp.eq.s32.totalorder %s1586_s16, 3 }
  0x12   : > { %p1332_p4 = por %p66_p1, %p65_p0  ;;  %p810_p5 = scmp.ge.s32.totalorder %s1231_s14, 1 }
  0x13   : > { %p1337_p6 = por %p223_p3, %p65_p0  ;;  %p286_p7 = scmp.lt.s32.totalorder %s1231_s14, 5 }
  0x14   : > { %s1602_s1 = sld [smem:[#allocation23_spill]]  ;;  %s1233_s23 = smov [#allocation5]  }
  0x15   : > { %s1600_s18 = scalar_select %p1337_p6, 1, 0 }
  0x16   : > { %p1345_p8 = pnand %p810_p5, %p286_p7  ;;  %s299_s24 = sshll.u32 %s1233_s23, 4  ;;  %s300_s24 = int_to_ptr.vmem [resolvable:$true] %s299_s24 }
  0x17   : > { %1601 = sst [smem:[#allocation21_spill]] %s1600_s18  ;;  %s1587_s29 = smov 128  }
  0x18   : > { %p871_p9 = pneg %p1345_p8  ;;  %s1605_s3 = sld [smem:[#allocation24_spill]] }
  0x19   : > { %s1588_s19 = smov 8   ;;  %s1236_s20 = smov [#allocation7]  }
  0x1a   : > { %s297_s21 = sshll.u32 %s1602_s1, 4  ;;  %p1353_p10 = pnand %p871_p9, %p66_p1  ;;  %s298_s21 = int_to_ptr.hbm [resolvable:$true] %s297_s21 }
  0x1b   : > { %s316_s23 = sshll.u32 %s1236_s20, 4  ;;  %s1606_s5 = sld [smem:[#allocation25_spill]]  ;;  %s317_s23 = int_to_ptr.vmem [resolvable:$true] %s316_s23 }
  0x1c   : > { %874 = dma.hbm_to_vmem [thread:$0]  (!%p1353_p10), %s298_s21, 512, %s300_s24, [#allocation6], %s1587_s29, %s1587_s29, %s1588_s19  }
  0x1d   : > { %s1237_s1 = smov [#allocation8]   ;;  %s43_s21 = sadd.s32 1, %s1227_s13 }
  0x1e   : > { %s314_s28 = sshll.u32 %s1605_s3, 4  ;;  %s333_s3 = sshll.u32 %s1237_s1, 4  ;;  %s315_s28 = int_to_ptr.hbm [resolvable:$true] %s314_s28  ;;  %s334_s3 = int_to_ptr.vmem [resolvable:$true] %s333_s3 }
  0x1f   : > { %877 = dma.hbm_to_vmem [thread:$0]  (!%p1353_p10), %s315_s28, 512, %s317_s23, [#allocation6], %s1587_s29, %s1587_s29, %s1588_s19  }
  0x20   : > { %p45_p11 = scmp.ge.s32.totalorder %s43_s21, 4  ;;  %s52_s24 = sadd.s32 1, %s1219_s11 }
  0x21   : > { %s331_s16 = sshll.u32 %s1606_s5, 4  ;;  %p59_p12 = scmp.ne.s32.totalorder %s1219_s11, %s1215_s10  ;;  %s332_s16 = int_to_ptr.hbm [resolvable:$true] %s331_s16 }
  0x22   : > { %880 = dma.hbm_to_vmem [thread:$0]  (!%p1353_p10), %s332_s16, 512, %s334_s3, [#allocation9], %s1587_s29, %s1587_s29, %s1588_s19  }
  0x23   : > { %p60_p13 = scmp.eq.s32.totalorder %s1231_s14, 0  ;;  %s1623_s21 = smov (%p45_p11, %s43_s21), 0 }
  0x24   : > { %1607 = sst [smem:[#allocation22_spill]] %s1623_s21  ;;  %p1391_p3 = por %p217_p2, %p59_p12 }
  0x25   : > { %p1385_p0 = por %p60_p13, %p59_p12  ;;  %s47_s25 = ssub.s32 %s1227_s13, %s1623_s21 }
  0x26   : > { %p898_p5 = scmp.lt.s32.totalorder %s1231_s14, 4  ;;  %p50_p7 = scmp.eq.s32.totalorder %s47_s25, 0 }
  0x27   : > { %s350_s3 = sand.u32 1, %s1219_s11   ;;  %s843_s23 = sshll.u32 %s1227_s13, 4 }
  0x28   : > { %s815_s16 = sshll.u32 %s350_s3, 4  ;;  %s361_s29 = scalar_lea.hbm %s1576_s0, %s843_s23 }
  0x29   : > { %s1400_s20 = scalar_select %p50_p7, %s1219_s11, %s52_s24  }
  0x2a   : > { %s354_s19 = scalar_lea.vmem [#allocation2], %s815_s16  ;;  %s362_s18 = sshll.u32 %s361_s29, 4  ;;  %s363_s18 = int_to_ptr.hbm [resolvable:$true] %s362_s18 }
  0x2b   : > { %s364_s5 = sshll.u32 %s354_s19, 4  ;;  %p882_p2 = pnand %p898_p5, %p1385_p0  ;;  %s365_s5 = int_to_ptr.vmem [resolvable:$true] %s364_s5 }
  0x2c   : > { %s351_s30 = scalar_lea.sflag [#allocation3], %s350_s3  ;;  %s1610_s21 = smov 8  }
  0x2d   : > { %s1611_s14 = smov 128   ;;  %376 = sbr.rel (%p1345_p8) target bundleno = 230 (0xe6), region = 48 }
  0x2e   : > { %884 = dma.hbm_to_vmem [thread:$0]  (!%p882_p2), %s363_s18, 256, %s365_s5, %s351_s30, %s1611_s14, %s1611_s14, %s1610_s21  }
  0x2f   : > { %s1414_s24 = sand.u32 (!%p1345_p8), 1, %s1215_s10  }
  0x30   : > { %s1417_s19 = sshll.u32 (!%p1345_p8), %s1414_s24, 4  ;;  %s379_s29 = scalar_lea.sflag (!%p1345_p8), [#allocation3], %s1414_s24 }
  0x31   : > { %s382_s28 = scalar_lea.vmem (!%p1345_p8), [#allocation2], %s1417_s19 }
  0x32   : > { %1190 = dma.done.wait (%p1332_p4), %s379_s29, 256  }
  0x33   : > { %1192 = vsyncadd (%p1332_p4), %s379_s29, 4294967040 }
  0x34   : > { %1194 = dma.done.wait (%p66_p1), [#allocation6], 1024  }
  0x35   : > { %1196 = vsyncadd (%p66_p1), [#allocation6], 4294966272 }
  0x36   : > { %1198 = dma.done.wait (%p66_p1), [#allocation9], 512  }
  0x37   : > { %1200 = vsyncadd (%p66_p1), [#allocation9], 4294966784  ;;  %v523_v0 = vld [vmem:[#allocation8 + $0x18] sm:$0xff]  ;;  %v522_v1 = vld [vmem:[#allocation8 + $0x10] sm:$0xff]  ;;  %vm457_vm0 = vcmask 261120   ;;  %s1450_s18 = scalar_lea.vmem [#allocation11], %s1417_s19 }
  0x38   : > { %540 = vmatpush.msra.mxu2 %v523_v0  ;;  %v492_v2 = vld [vmem:[#allocation7 + $0x18] sm:$0xff]  ;;  %v521_v4 = vld [vmem:[#allocation8 + $0x8] sm:$0xff]  ;;  %v491_v5 = vld [vmem:[#allocation7 + $0x10] sm:$0xff]  ;;  %s601_s22 = sshll.u32 %s1450_s18, 4  ;;  %s844_s21 = sshll.u32 %s1223_s12, 4  ;;  %s1459_s22 = int_to_ptr.vmem [resolvable:$true] %s601_s22 }
  0x39   : > { %v452_v3 = vld [vmem:[#allocation5 + $0x18] sm:$0xff]  ;;  %509 = vmatpush.msra.mxu1 %v492_v2  ;;  %v451_v6 = vld [vmem:[#allocation5 + $0x10] sm:$0xff]  ;;  %v490_v7 = vld [vmem:[#allocation7 + $0x8] sm:$0xff]  ;;  %s562_s16 = sand.u32 1, %s1321_s15   ;;  %s600_s27 = scalar_lea.hbm %s1584_s8, %s844_s21 }
  0x3a   : > { %847 = vmatpush.msra.mxu3 %v452_v3  ;;  %541 = vmatpush.msra.mxu2 %v522_v1  ;;  %v450_v8 = vld [vmem:[#allocation5 + $0x8] sm:$0xff]  ;;  %v520_v9 = vld [vmem:[#allocation8] sm:$0xff]  ;;  %s1466_s29 = scalar_lea.vmem [#allocation13], %s1417_s19  ;;  %s581_s30 = scalar_lea.hbm %s1583_s7, %s844_s21 }
  0x3b   : > { %476 = vmatpush.msra.mxu0 %v452_v3  ;;  %510 = vmatpush.msra.mxu1 %v491_v5  ;;  %v447_v10 = vld [vmem:[%s382_s28] sm:$0xff]  ;;  %v448_v13 = vld [vmem:[%s382_s28 + $0x8] sm:$0xff]  ;;  %s620_s12 = sshll.u32 %s1466_s29, 4  ;;  %s428_s14 = scalar_lea.vmem [#allocation10], %s1417_s19  ;;  %s1491_s12 = int_to_ptr.vmem [resolvable:$true] %s620_s12 }
  0x3c   : > { %848 = vmatpush.msra.mxu3 %v451_v6  ;;  %542 = vmatpush.msra.mxu2 %v521_v4  ;;  %v489_v11 = vld [vmem:[#allocation7] sm:$0xff]  ;;  %s582_s17 = sshll.u32 %s428_s14, 4  ;;  %s619_s3 = scalar_lea.hbm %s1585_s9, %s844_s21  ;;  %s1488_s17 = int_to_ptr.vmem [resolvable:$true] %s582_s17 }
  0x3d   : > { %477 = vmatpush.msra.mxu0 %v451_v6  ;;  %511 = vmatpush.msra.mxu1 %v490_v7  ;;  %v449_v12 = vld [vmem:[#allocation5] sm:$0xff]  ;;  %s1477_s23 = sshll.u32 %s600_s27, 4  ;;  %s1481_s26 = sshll.u32 %s581_s30, 4  ;;  %s604_s23 = int_to_ptr.hbm [resolvable:$true] %s1477_s23  ;;  %s585_s26 = int_to_ptr.hbm [resolvable:$true] %s1481_s26 }
  0x3e   : > { %849 = vmatpush.msra.mxu3 %v450_v8  ;;  %543 = vmatpush.msra.mxu2 %v520_v9  ;;  %v958_v14 = vld [vmem:[%s1580_s4] ss:$0 sm:$0xff]  ;;  %s1483_s19 = sshll.u32 %s619_s3, 4  ;;  %s1495_s21 = scalar_lea.sflag [#allocation12], %s562_s16  ;;  %s623_s19 = int_to_ptr.hbm [resolvable:$true] %s1483_s19 }
  0x3f   : > { %478 = vmatpush.msra.mxu0 %v450_v8  ;;  %830 = vmatmul.msk.f32.vlgmr.msra.gmra.mxu2 %vm457_vm0, %v447_v10  ;;  %v960_v15 = vld [vmem:[%s1578_s2] ss:$0 sm:$0xff]  ;;  %s1095_s27 = sshra.s32 %s604_s23, 4  ;;  %s1101_s30 = scalar_lea.hbm %s1584_s8, 64  ;;  %s1096_s27 = int_to_ptr.hbm [resolvable:$true] %s1095_s27 }
  0x40   : > { %512 = vmatpush.msra.mxu1 %v489_v11  ;;  %850 = vmatpush.msra.mxu3 %v449_v12  ;;  %v959_v18 = vld [vmem:[%s1582_s6] ss:$0 sm:$0xff]  ;;  %s1097_s28 = scalar_lea.hbm %s1096_s27, 16  ;;  %p1102_p9 = scmp.lt.s32.totalorder %s1096_s27, %s1584_s8 }
  0x41   : > { %828 = vmatmul.msk.f32.vlgmr.msra.gmra.mxu1 %vm457_vm0, %v447_v10  ;;  %827 = vmatmul.msk.f32.vlgmr.msra.gmra.mxu3 %vm457_vm0, %v448_v13  ;;  %p1098_p1 = scmp.ne.s32.totalorder %s1096_s27, %s1097_s28  ;;  %p1103_p10 = scmp.lt.s32.totalorder %s1101_s30, %s1097_s28 }
  0x42   : > { %479 = vmatpush.msra.mxu0 %v449_v12 }
  0x43   : > { %826 = vmatmul.msk.f32.vlgmr.msra.gmra.mxu0 %vm457_vm0, %v447_v10  ;;  %p1099_p4 = pnand %p1098_p1, %p1391_p3  ;;  %p1104_p11 = por %p1103_p10, %p1102_p9 }
  0x45   : > { %p1100_p8 = pneg %p1099_p4 }
  0x47   : > { %831 = vmatmul.msk.f32.gmra.mxu2 %vm457_vm0, %v448_v13  ;;  %p1105_p12 = pnand %p1104_p11, %p1100_p8 }
  0x49   : > { %829 = vmatmul.msk.f32.gmra.mxu1 %vm457_vm0, %v448_v13 }
  0xbe   : > { %v514_v16 = vpop.f32.mrf.mxu1 }
  0xbf   : > { %v515_v17 = vadd.f32 %v958_v14, %v514_v16 }
  0xc0   : > { %v481_v19 = vpop.f32.mrf.mxu0 }
  0xc1   : > { %553 = vst.msk [vmem:[%s1450_s18] sm:$0xff] %vm457_vm0, %v515_v17  ;;  %v482_v20 = vadd.f32 %v960_v15, %v481_v19 }
  0xc2   : > { %v545_v21 = vpop.f32.mrf.mxu2 }
  0xc3   : > { %v487_v22 = vmul.f32 0.35355338, %v482_v20  ;;  %v546_v23 = vadd.f32 %v959_v18, %v545_v21 }
  0xc4   : > { %v484_v24 = vpop.f32.mrf.mxu3 }
  0xc5   : > { %551 = vst.msk [vmem:[%s428_s14] sm:$0xff] %vm457_vm0, %v487_v22  ;;  %v485_v25 = vadd.f32 %v960_v15, %v484_v24 }
  0xc6   : > { %555 = vst.msk [vmem:[%s1466_s29] sm:$0xff] %vm457_vm0, %v546_v23  ;;  %v517_v26 = vpop.f32.mrf.mxu1 }
  0xc7   : > { %v518_v27 = vadd.f32 %v958_v14, %v517_v26  ;;  %v488_v28 = vmul.f32 0.35355338, %v485_v25 }
  0xc9   : > { %554 = vst.msk [vmem:[%s1450_s18 + $0x8] sm:$0xff] %vm457_vm0, %v518_v27 }
  0xca   : > { %552 = vst.msk [vmem:[%s428_s14 + $0x8] sm:$0xff] %vm457_vm0, %v488_v28  ;;  %v548_v29 = vpop.f32.mrf.mxu2 }
  0xcb   : > { %1108 = shalt.err (!%p1105_p12)
}
  0xcc   : > { %s1238_s16 = smov 128   ;;  %s1239_s14 = smov 8   ;;  %v549_v30 = vadd.f32 %v959_v18, %v548_v29 }
  0xcd   : > { %866 = dma.vmem_to_hbm [thread:$0]  (%p1391_p3), %s1459_s22, 256, %s604_s23, %s1495_s21, %s1238_s16, %s1238_s16, %s1239_s14  }
  0xce   : > { %s558_s3 = scalar_lea.sflag [#allocation4], %s1414_s24  ;;  %s1123_s27 = sshra.s32 %s585_s26, 4  ;;  %s1124_s27 = int_to_ptr.hbm [resolvable:$true] %s1123_s27 }
  0xcf   : > { %s1125_s28 = scalar_lea.hbm %s1124_s27, 16  ;;  %s1129_s30 = scalar_lea.hbm %s1583_s7, 64 }
  0xd0   : > { %p1126_p13 = scmp.ne.s32.totalorder %s1124_s27, %s1125_s28  ;;  %p1130_p7 = scmp.lt.s32.totalorder %s1124_s27, %s1583_s7 }
  0xd1   : > { %p1131_p2 = scmp.lt.s32.totalorder %s1129_s30, %s1125_s28 }
  0xd2   : > { %p1127_p0 = pnand %p1126_p13, %p1391_p3 }
  0xd3   : > { %p1132_p1 = por %p1131_p2, %p1130_p7 }
  0xd4   : > { %p1128_p5 = pneg %p1127_p0 }
  0xd6   : > { %p1133_p4 = pnand %p1132_p1, %p1128_p5 }
  0xd8   : > { %1136 = shalt.err (!%p1133_p4)
}
  0xd9   : > { %865 = dma.vmem_to_hbm [thread:$0]  (%p1391_p3), %s1488_s17, 256, %s585_s26, %s558_s3, %s1238_s16, %s1238_s16, %s1239_s14  }
  0xda   : > { %556 = vst.msk [vmem:[%s1466_s29 + $0x8] sm:$0xff] %vm457_vm0, %v549_v30  ;;  %s1151_s24 = sshra.s32 %s623_s19, 4  ;;  %s1157_s28 = scalar_lea.hbm %s1585_s9, 64  ;;  %s1152_s24 = int_to_ptr.hbm [resolvable:$true] %s1151_s24 }
  0xdb   : > { %s1153_s22 = scalar_lea.hbm %s1152_s24, 16  ;;  %p1158_p11 = scmp.lt.s32.totalorder %s1152_s24, %s1585_s9 }
  0xdc   : > { %p1154_p8 = scmp.ne.s32.totalorder %s1152_s24, %s1153_s22  ;;  %p1159_p12 = scmp.lt.s32.totalorder %s1157_s28, %s1153_s22 }
  0xde   : > { %p1155_p9 = pnand %p1154_p8, %p1391_p3  ;;  %p1160_p13 = por %p1159_p12, %p1158_p11 }
  0xe0   : > { %p1156_p10 = pneg %p1155_p9 }
  0xe2   : > { %p1161_p0 = pnand %p1160_p13, %p1156_p10 }
  0xe4   : > { %1164 = shalt.err (!%p1161_p0)
}
  0xe5   : > { %867 = dma.vmem_to_hbm [thread:$0]  (%p1391_p3), %s1491_s12, 256, %s623_s19, %s1495_s21, %s1238_s16, %s1238_s16, %s1239_s14  }
  0xe6 PF: > { %s1612_s29 = sld [smem:[#allocation20_spill]] }
  0xe7   : > { %s1613_s17 = sld [smem:[#allocation19_spill]] }
  0xec   : > { %p902_p5 = scmp.ge.s32.totalorder %s1612_s29, 2 }
  0xed   : > { %s637_s3 = sand.u32 1, %s1613_s17  }
  0xee   : > { %p886_p7 = pnand %p902_p5, %p1337_p6  ;;  %s638_s30 = scalar_lea.sflag [#allocation4], %s637_s3 }
  0xf0   : > { %p887_p2 = pneg %p886_p7 }
  0xf2   : > { %1202 = dma.done.wait (%p887_p2), %s638_s30, 256  }
  0xf3   : > { %1204 = vsyncadd (%p887_p2), %s638_s30, 4294967040  ;;  %s1615_s1 = sadd.s32 4294967294, %s1612_s29  }
  0xf4   : > { %s647_s15 = sand.u32 1, %s1615_s1  }
  0xf5   : > { %s648_s25 = scalar_lea.sflag [#allocation12], %s647_s15 }
  0xf6   : > { %1206 = dma.done.wait (%p887_p2), %s648_s25, 512  }
  0xf7   : > { %1208 = vsyncadd (%p887_p2), %s648_s25, 4294966784  ;;  %s31_s14 = sadd.s32 1, %s1612_s29   ;;  %s1616_s19 = sld [smem:[#allocation22_spill]] }
  0xf8   : > { %p28_p3 = scmp.ge.s32.totalorder %s31_s14, 6   ;;  %s1617_s30 = smov %s1215_s10 }
  0xf9   : > { %s1618_s10 = smov %s1219_s11  ;;  %s1619_s11 = smov %s1400_s20 }
  0xfa   : > { %s1620_s12 = smov %s1227_s13  ;;  %30 = sbr.rel (!%p28_p3) target bundleno = 14 (0xe), region = 137 }
  0xfd   : > { %s1621_s13 = smov %s1616_s19 }
  0xff   :  { %664 = vsyncpa [#allocation3], 1 }
 0x100   :  { %666 = vsyncpa [#allocation3 + $0x1], 1 }
 0x101   :  { %667 = vsyncpa [#allocation6], 1 }
 0x102   :  { %668 = vsyncpa [#allocation9], 1 }
 0x103   :  { %669 = vsyncpa [#allocation4], 1 }
 0x104   :  { %671 = vsyncpa [#allocation4 + $0x1], 1 }
 0x105   :  { %672 = vsyncpa [#allocation12], 1 }
 0x106   :  { %674 = vsyncpa [#allocation12 + $0x1], 1 }

</bundles_post_ra>
